<compile_context>
chip_gen: v7x
topology: tpu7x:2x2x1
jax: 0.10.0
libtpu: 0.0.40
codegen_flags: <defaults>
</compile_context>

<pallas_src>
import jax
import jax.numpy as jnp
from jax.experimental import pallas as pl
from jax.experimental.pallas import tpu as pltpu


# ----------------------------------------------------------------------------
# Kernel
# ----------------------------------------------------------------------------
def swiglu_kernel(x_ref, w_ref, b_ref, o_ref):
    # x_ref: (TM, K)       compute dtype (bf16 by default)
    # w_ref: (K, 2*TN)     columns [:TN] = W_lin block, [TN:] = W_gate block
    # b_ref: (1, 2*TN)     f32, same packing
    # o_ref: (TM, TN)
    tn = o_ref.shape[-1]
    fused = jnp.dot(x_ref[...], w_ref[...],
                    preferred_element_type=jnp.float32) + b_ref[...]
    lin = fused[:, :tn]       # tn is a multiple of 128 -> lane-tile aligned slice
    gate = fused[:, tn:]
    o_ref[...] = (lin * jax.nn.sigmoid(lin) * gate).astype(o_ref.dtype)


# ----------------------------------------------------------------------------
# Sizing helpers
# ----------------------------------------------------------------------------
def _round_up(a, b):
    return ((a + b - 1) // b) * b


def _vmem_budget_bytes():
    """~3/4 of this generation's VMEM (48 MiB on v7x, 96 MiB on v5e/v6e)."""
    try:
        info = pltpu.get_tpu_info()
        cap = getattr(info, "vmem_capacity_bytes", None)
        if cap:
            return int(cap) * 3 // 4
    except Exception:
        pass
    return 48 * 1024 * 1024  # conservative default; fits v7x's 64 MiB


def _choose_tn(K, N, itemsize, budget):
    np128 = _round_up(N, 128)
    tn = 512  # v6e sweet spot; shrink if the weight slab would blow VMEM
    while tn > 128 and 2 * K * 2 * tn * itemsize > budget // 2:
        tn //= 2
    tn = max(128, tn)
    if np128 <= tn:            # single N block, lane-dense
        tn = np128
    return tn


def _choose_tm(M, K, tn, itemsize, out_itemsize, budget, sublane):
    Ms = _round_up(max(M, 1), sublane)
    # Small/medium M: keep all of x resident across the N axis (streamed once).
    if Ms * K * itemsize <= 16 * 1024 * 1024:
        return Ms

    def vmem_need(tm):
        return (2 * tm * K * itemsize          # x tile, double-buffered
                + 2 * K * 2 * tn * itemsize    # fused weight slab, double-buffered
                + 2 * tm * tn * out_itemsize   # output tile, double-buffered
                + tm * 2 * tn * 4              # f32 matmul intermediate
                + 2 * 2 * tn * 4)              # bias

    tm = 512
    while tm > sublane and vmem_need(tm) > budget:
        tm //= 2
    return max(sublane, min(tm, Ms))


# ----------------------------------------------------------------------------
# One-time parameter packing (do NOT call per step)
# ----------------------------------------------------------------------------
def pack_swiglu_params(w_lin, b_lin, w_gate, b_gate, *,
                       tn=None, compute_dtype=jnp.bfloat16):
    """Pack + cast nn.Linear weights into a blockwise-fused (K, 2*Np) weight
    and (1, 2*Np) f32 bias.  Call once at init; every swiglu() call reuses the
    result, so no weight copy/cast traffic is paid per call."""
    K, N = w_lin.shape
    assert w_gate.shape == (K, N)
    if compute_dtype is None:
        compute_dtype = w_lin.dtype
    itemsize = jnp.dtype(compute_dtype).itemsize
    budget = _vmem_budget_bytes()
    if tn is None:
        tn = _choose_tn(K, N, itemsize, budget)
    assert tn % 128 == 0, "tn must be a multiple of 128 (lane-dense)"
    Np = _round_up(N, tn)

    w_lin = w_lin.astype(compute_dtype)
    w_gate = w_gate.astype(compute_dtype)
    b_lin = b_lin.astype(jnp.float32)
    b_gate = b_gate.astype(jnp.float32)
    if Np != N:
        w_lin = jnp.pad(w_lin, ((0, 0), (0, Np - N)))
        w_gate = jnp.pad(w_gate, ((0, 0), (0, Np - N)))
        b_lin = jnp.pad(b_lin, ((0, Np - N),))
        b_gate = jnp.pad(b_gate, ((0, Np - N),))

    n_nb = Np // tn
    # Block j of the fused weight holds [W_lin[:, j*tn:(j+1)*tn] | W_gate[...]].
    w_fused = jnp.concatenate(
        [w_lin.reshape(K, n_nb, tn), w_gate.reshape(K, n_nb, tn)],
        axis=-1).reshape(K, 2 * Np)
    b_fused = jnp.concatenate(
        [b_lin.reshape(n_nb, tn), b_gate.reshape(n_nb, tn)],
        axis=-1).reshape(1, 2 * Np)

    return dict(w_fused=w_fused, b_fused=b_fused, tn=int(tn), K=int(K),
                N=int(N), Np=int(Np), compute_dtype=compute_dtype)


# ----------------------------------------------------------------------------
# Forward pass
# ----------------------------------------------------------------------------
def swiglu(x, params, *, tm=None, out_dtype=None):
    """x: (..., K). Returns (..., N) = silu(x @ w_lin + b_lin) * (x @ w_gate + b_gate)."""
    K, N, Np, tn = params["K"], params["N"], params["Np"], params["tn"]
    compute_dtype = params["compute_dtype"]
    w_fused, b_fused = params["w_fused"], params["b_fused"]

    orig_shape = x.shape
    assert orig_shape[-1] == K
    out_dtype = x.dtype if out_dtype is None else out_dtype

    x2 = x.reshape(-1, K).astype(compute_dtype)
    M = x2.shape[0]

    itemsize = jnp.dtype(compute_dtype).itemsize
    sublane = 32 if itemsize == 1 else (16 if itemsize == 2 else 8)
    budget = _vmem_budget_bytes()

    if tm is None:
        tm = _choose_tm(M, K, tn, itemsize, jnp.dtype(out_dtype).itemsize,
                        budget, sublane)
    tm = max(sublane, _round_up(min(tm, _round_up(M, sublane)), sublane))

    Mp = _round_up(M, tm)
    if Mp != M:
        x2 = jnp.pad(x2, ((0, Mp - M), (0, 0)))

    n_nb = Np // tn
    n_mb = Mp // tm

    out = pl.pallas_call(
        swiglu_kernel,
        out_shape=jax.ShapeDtypeStruct((Mp, Np), out_dtype),
        grid_spec=pltpu.PrefetchScalarGridSpec(
            num_scalar_prefetch=0,
            # N/weight axis outer: each weight slab is DMA'd once and reused
            # across all M tiles within a TensorCore's sequential loop.
            grid=(n_nb, n_mb),
            in_specs=[
                pl.BlockSpec((tm, K), lambda j, i: (i, 0)),        # x tile
                pl.BlockSpec((K, 2 * tn), lambda j, i: (0, j)),    # fused weights
                pl.BlockSpec((1, 2 * tn), lambda j, i: (0, j)),    # fused biases
            ],
            out_specs=pl.BlockSpec((tm, tn), lambda j, i: (i, j)),
        ),
        compiler_params=pltpu.CompilerParams(
            # Every output block is written exactly once -> both axes parallel
            # (lets v7x megacore shard whichever axis is long).
            dimension_semantics=("parallel", "parallel"),
            vmem_limit_bytes=int(budget),
        ),
    )(x2, w_fused, b_fused)

    out = out[:M, :N]
    return out.reshape(*orig_shape[:-1], N)


def init_linear_params(key, input_dim, output_dim, dtype=jnp.float32):
    # Mimics PyTorch nn.Linear default init: U(-1/sqrt(in), 1/sqrt(in)).
    kw, kb = jax.random.split(key)
    bound = 1.0 / (input_dim ** 0.5)
    w = jax.random.uniform(kw, (input_dim, output_dim), dtype, -bound, bound)
    b = jax.random.uniform(kb, (output_dim,), dtype, -bound, bound)
    return w, b


if __name__ == "__main__":
    key = jax.random.PRNGKey(0)
    k_x, k_lin, k_gate = jax.random.split(key, 3)

    batch, seq, input_dim, output_dim = 2, 8, 32, 32
    x = jax.random.normal(k_x, (batch, seq, input_dim), jnp.float32)

    w_lin, b_lin = init_linear_params(k_lin, input_dim, output_dim)
    w_gate, b_gate = init_linear_params(k_gate, input_dim, output_dim)

    # Pure-JAX f32 reference.
    lin = x @ w_lin + b_lin
    gate = x @ w_gate + b_gate
    ref = (lin * jax.nn.sigmoid(lin)) * gate

    # 1) Default path: bf16 operands, f32 accumulation / silu math.
    params_bf16 = pack_swiglu_params(w_lin, b_lin, w_gate, b_gate)
    out = jax.block_until_ready(swiglu(x, params_bf16))
    assert out.shape == (batch, seq, output_dim)
    assert jnp.allclose(out, ref, atol=3e-2, rtol=3e-2), "bf16 path mismatch"

    # 2) f32 operand path for a tight numerical check.
    params_f32 = pack_swiglu_params(w_lin, b_lin, w_gate, b_gate,
                                    compute_dtype=jnp.float32)
    out_f32 = jax.block_until_ready(swiglu(x, params_f32))
    assert out_f32.shape == (batch, seq, output_dim)
    assert jnp.allclose(out_f32, ref, atol=1e-5, rtol=1e-5), "f32 path mismatch"

    print("KERNEL_OK")
</pallas_src>

<mosaic_0001>
module attributes {stable_mosaic.version = 11 : i64} {
  func.func @swiglu_kernel(%arg0: i32, %arg1: i32, %arg2: memref<16x32xbf16, #tpu.memory_space<vmem>>, %arg3: memref<32x256xbf16, #tpu.memory_space<vmem>>, %arg4: memref<1x256xf32, #tpu.memory_space<vmem>>, %arg5: memref<16x128xf32, #tpu.memory_space<vmem>>) attributes {dimension_semantics = [#tpu.dimension_semantics<parallel>, #tpu.dimension_semantics<parallel>], iteration_bounds = array<i64: 1, 1>, scalar_prefetch = 0 : i64, scratch_operands = 0 : i64, tpu.core_type = #tpu.core_type<tc>, window_params = [{transform_indices = @transform_0, window_bounds = array<i64: 16, 32>}, {transform_indices = @transform_1, window_bounds = array<i64: 32, 256>}, {transform_indices = @transform_2, window_bounds = array<i64: 1, 256>}, {transform_indices = @transform_3, window_bounds = array<i64: 16, 128>}]} {
    %c0 = arith.constant 0 : index
    %c0_0 = arith.constant 0 : index
    %0 = vector.load %arg2[%c0, %c0_0] : memref<16x32xbf16, #tpu.memory_space<vmem>>, vector<16x32xbf16>
    %c0_1 = arith.constant 0 : index
    %c0_2 = arith.constant 0 : index
    %1 = vector.load %arg3[%c0_1, %c0_2] : memref<32x256xbf16, #tpu.memory_space<vmem>>, vector<32x256xbf16>
    %cst = arith.constant dense<0.000000e+00> : vector<16x256xf32>
    %2 = tpu.matmul %0, %1, %cst {dimension_numbers = #tpu.dot_dimension_numbers<[1], [0], [0], [1], [0, 0, 1, 1], [], []>} : vector<16x32xbf16>, vector<32x256xbf16>, vector<16x256xf32> -> vector<16x256xf32>
    %c0_3 = arith.constant 0 : index
    %c0_4 = arith.constant 0 : index
    %3 = vector.load %arg4[%c0_3, %c0_4] : memref<1x256xf32, #tpu.memory_space<vmem>>, vector<1x256xf32>
    %4 = vector.broadcast %3 : vector<1x256xf32> to vector<16x256xf32>
    %5 = arith.addf %2, %4 : vector<16x256xf32>
    %6 = vector.extract_strided_slice %5 {offsets = [0, 0], sizes = [16, 128], strides = [1, 1]} : vector<16x256xf32> to vector<16x128xf32>
    %7 = vector.extract_strided_slice %5 {offsets = [0, 128], sizes = [16, 128], strides = [1, 1]} : vector<16x256xf32> to vector<16x128xf32>
    %8 = arith.negf %6 : vector<16x128xf32>
    %9 = math.exp %8 : vector<16x128xf32>
    %cst_5 = arith.constant 1.000000e+00 : f32
    %10 = vector.broadcast %cst_5 : f32 to vector<16x128xf32>
    %11 = arith.addf %10, %9 : vector<16x128xf32>
    %12 = arith.divf %10, %11 : vector<16x128xf32>
    %13 = arith.mulf %6, %12 : vector<16x128xf32>
    %14 = arith.mulf %13, %7 : vector<16x128xf32>
    %c0_6 = arith.constant 0 : index
    %c0_7 = arith.constant 0 : index
    %15 = vector.load %arg5[%c0_6, %c0_7] : memref<16x128xf32, #tpu.memory_space<vmem>>, vector<16x128xf32>
    tpu.vector_store %arg5[%c0_6, %c0_7], %14 {strides = array<i32>} : memref<16x128xf32, #tpu.memory_space<vmem>>, vector<16x128xf32>,
    return
  }
  func.func @transform_0(%arg0: i32, %arg1: i32) -> (i32, i32) {
    %c0_i32 = arith.constant 0 : i32
    %c0_i32_0 = arith.constant 0 : i32
    return %arg1, %c0_i32 : i32, i32
  }
  func.func @transform_1(%arg0: i32, %arg1: i32) -> (i32, i32) {
    %c0_i32 = arith.constant 0 : i32
    %c0_i32_0 = arith.constant 0 : i32
    return %c0_i32, %arg0 : i32, i32
  }
  func.func @transform_2(%arg0: i32, %arg1: i32) -> (i32, i32) {
    %c0_i32 = arith.constant 0 : i32
    %c0_i32_0 = arith.constant 0 : i32
    return %c0_i32, %arg0 : i32, i32
  }
  func.func @transform_3(%arg0: i32, %arg1: i32) -> (i32, i32) {
    %c0_i32 = arith.constant 0 : i32
    return %arg1, %arg0 : i32, i32
  }
}

</mosaic_0001>

<bundles_post_ra>
// kernel: tpu_custom_call.1
= control target key start
LH: loop header
LB: loop body
LE: loop exit
PB: predicated region body
PF: predicated region fallthrough
CT: control target
= control target key end

     0   :  { %8 = vsyncpa [#allocation3], 0  ;;  %s346_s0 = inlined_call_operand.hbm [shape: bf16[16,32], index: 0, kind: input, shape index: {}]   ;;  %s347_s1 = inlined_call_operand.hbm [shape: bf16[32,256], index: 1, kind: input, shape index: {}]   ;;  %s348_s2 = inlined_call_operand.vmem [shape: f32[1,256], index: 2, kind: input, shape index: {}]   ;;  %s349_s3 = inlined_call_operand.hbm [shape: f32[16,128], index: 3, kind: output, shape index: {}]  }
   0x1   :  { %9 = vsyncpa [#allocation6], 0 }
   0x2   :  { %10 = vsyncpa [#allocation4], 0  ;;  %s273_s12 = smov [#allocation2]   ;;  %s201_s16 = scalar_lea.hbm %s346_s0, 128 }
   0x3   :  { %s16_s13 = sshll.u32 %s273_s12, 4  ;;  %p202_p0 = scmp.ne.s32.totalorder %s346_s0, %s201_s16  ;;  %s17_s13 = int_to_ptr.vmem [resolvable:$true] %s16_s13 }
   0x4   :  { %p205_p1 = scmp.lt.u32.totalorder %s201_s16, %s346_s0 }
   0x6   :  { %p207_p2 = pnand %p205_p1, %p202_p0 }
   0x8   :  { %210 = shalt.err (!%p207_p2)
}
   0x9   :  { %s211_s21 = scalar_lea.vmem %s17_s13, 128  ;;  %p216_p4 = scmp.lt.s32.totalorder %s17_s13, %s17_s13 }
   0xa   :  { %p212_p3 = scmp.ne.s32.totalorder %s17_s13, %s211_s21  ;;  %p217_p5 = scmp.lt.s32.totalorder %s211_s21, %s211_s21 }
   0xc   :  { %p218_p6 = por %p217_p5, %p216_p4 }
   0xe   :  { %p219_p7 = pnand %p218_p6, %p212_p3 }
  0x10   :  { %222 = shalt.err (!%p219_p7)
}
  0x11   :  { %s274_s22 = smov 64   ;;  %s275_s23 = smov 4  }
  0x12   :  { %22 = dma.hbm_to_vmem [thread:$0]  %s346_s0, 128, %s17_s13, [#allocation3], %s274_s22, %s274_s22, %s275_s23  }
  0x13   :  { %s276_s26 = smov [#allocation5]   ;;  %s223_s30 = scalar_lea.hbm %s347_s1, 512 }
  0x14   :  { %s28_s27 = sshll.u32 %s276_s26, 4  ;;  %p224_p8 = scmp.ne.s32.totalorder %s347_s1, %s223_s30  ;;  %s29_s27 = int_to_ptr.vmem [resolvable:$true] %s28_s27 }
  0x15   :  { %p227_p9 = scmp.lt.u32.totalorder %s223_s30, %s347_s1 }
  0x17   :  { %p229_p10 = pnand %p227_p9, %p224_p8 }
  0x19   :  { %232 = shalt.err (!%p229_p10)
}
  0x1a   :  { %s233_s8 = scalar_lea.vmem %s29_s27, 512  ;;  %p238_p12 = scmp.lt.s32.totalorder %s29_s27, %s29_s27 }
  0x1b   :  { %p234_p11 = scmp.ne.s32.totalorder %s29_s27, %s233_s8  ;;  %p239_p13 = scmp.lt.s32.totalorder %s233_s8, %s233_s8 }
  0x1d   :  { %p240_p0 = por %p239_p13, %p238_p12 }
  0x1f   :  { %p241_p1 = pnand %p240_p0, %p234_p11 }
  0x21   :  { %244 = shalt.err (!%p241_p1)
}
  0x22   :  { %s277_s0 = smov 128   ;;  %s278_s9 = smov 8  }
  0x23   :  { %34 = dma.hbm_to_vmem [thread:$0]  %s347_s1, 512, %s29_s27, [#allocation6], %s277_s0, %s277_s0, %s278_s9  }
  0x24   :  { %267 = dma.done.wait [#allocation3], 128  }
  0x25   :  { %268 = vsyncadd [#allocation3], 4294967168 }
  0x26   :  { %269 = dma.done.wait [#allocation6], 512  }
  0x27   :  { %270 = vsyncadd [#allocation6], 4294966784  ;;  %v279_v0 = vmov 0   ;;  %v186_v1 = vld [vmem:[#allocation5 + $0x4] ss:$8 sps:$4 sm:$0xff]   ;;  %v192_v5 = vld [vmem:[#allocation2] sm:$0xff]   ;;  %v52_v6 = vlaneseq }
  0x28   :  { %123 = vmatprep.mubr.bf16.mxu0 %v279_v0  ;;  %v188_v2 = vld [vmem:[#allocation5] ss:$8 sps:$4 sm:$0xff]   ;;  %91 = vmatprep.subr.bf16.mxu0 %v186_v1  ;;  %v189_v3 = vld [vmem:[#allocation5 + $0x14] ss:$8 sps:$4 sm:$0xff]   ;;  %v191_v4 = vld [vmem:[#allocation5 + $0x10] ss:$8 sps:$4 sm:$0xff]  }
  0x29   :  { %92 = vmatpush1.bf16.msra.mxu0 %v188_v2  ;;  %vm87_vm0 = vcmask 261120   ;;  %v53_v7 = vshrl.u32 %v52_v6, 7  ;;  %v50_v9 = vld [vmem:[%s348_s2] sm:$0x3]  ;;  %s280_s2 = smov [#allocation7]  }
  0x2a   :  { %93 = vmatprep.subr.bf16.mxu0 %v189_v3  ;;  %s157_s13 = sshll.u32 %s280_s2, 4  ;;  %s158_s13 = int_to_ptr.vmem [resolvable:$true] %s157_s13 }
  0x2b   :  { %v54_v8 = vsub.s32 0, %v53_v7  ;;  %v58_v23 = vsub.s32 1, %v53_v7  ;;  %s245_s14 = scalar_lea.vmem %s158_s13, 256  ;;  %p250_p3 = scmp.lt.s32.totalorder %s158_s13, %s158_s13 }
  0x2c   :  { %p246_p2 = scmp.ne.s32.totalorder %s158_s13, %s245_s14  ;;  %p251_p4 = scmp.lt.s32.totalorder %s245_s14, %s245_s14 }
  0x2d   :  { %94 = vmatpush1.bf16.msra.mxu0 %v191_v4  ;;  %v55_v10 = vrot.slane %v50_v9, %v54_v8  ;;  %v59_v24 = vrot.slane %v50_v9, %v58_v23 }
  0x2e   :  { %p252_p5 = por %p251_p4, %p250_p3 }
  0x30   :  { %175 = vmatmul.mubr.msk.bf16.vlgmr.msra.gmra.mrb[0].mxu0 %vm87_vm0, %v192_v5  ;;  %p253_p6 = pnand %p252_p5, %p246_p2 }
 0x103   :  { %v125_v11 = vpop.f32.mrb[0].mxu0 }
 0x104   :  { %v126_v12 = vadd.f32 %v125_v11, %v55_v10  ;;  %v127_v13 = vpop.f32.mrb[1].mxu0 }
 0x105   :  { %v129_v14 = vpop.f32.mrb[2].mxu0  ;;  %v128_v27 = vadd.f32 %v127_v13, %v59_v24 }
 0x106   :  { %v176_v15 = vmul.f32 -1.442695, %v126_v12  ;;  %v130_v16 = vadd.f32 %v129_v14, %v55_v10  ;;  %v131_v17 = vpop.f32.mrb[3].mxu0 }
 0x107   :  { %v132_v31 = vadd.f32 %v131_v17, %v59_v24 }
 0x108   :  { %193 = vpow2.f32 %v176_v15  ;;  %v177_v18 = vmul.f32 -1.442695, %v130_v16 }
 0x10a   :  { %195 = vpow2.f32 %v177_v18 }
 0x112   :  { %v194_v19 = vpop.eup %193 }
 0x113   :  { %v140_v20 = vadd.f32 1.0, %v194_v19 }
 0x114   :  { %v196_v21 = vpop.eup %195 }
 0x115   :  { %197 = vrcp.f32 %v140_v20  ;;  %v141_v22 = vadd.f32 1.0, %v196_v21 }
 0x117   :  { %199 = vrcp.f32 %v141_v22 }
 0x11f   :  { %v198_v25 = vpop.eup %197 }
 0x120   :  { %v146_v26 = vmul.f32 %v198_v25, %v126_v12 }
 0x121   :  { %v200_v28 = vpop.eup %199 }
 0x122   :  { %v148_v29 = vmul.f32 %v146_v26, %v128_v27  ;;  %v147_v30 = vmul.f32 %v200_v28, %v130_v16 }
 0x124   :  { %150 = vst [vmem:[#allocation7] sm:$0xff] %v148_v29  ;;  %v149_v32 = vmul.f32 %v147_v30, %v132_v31 }
 0x126   :  { %151 = vst [vmem:[#allocation7 + $0x8] sm:$0xff] %v149_v32 }
 0x127   :  { %256 = shalt.err (!%p253_p6)
}
 0x128   :  { %s257_s17 = scalar_lea.hbm %s349_s3, 256 }
 0x129   :  { %p258_p7 = scmp.ne.s32.totalorder %s349_s3, %s257_s17  ;;  %p261_p8 = scmp.lt.u32.totalorder %s257_s17, %s349_s3 }
 0x12b   :  { %p263_p9 = pnand %p261_p8, %p258_p7 }
 0x12d   :  { %266 = shalt.err (!%p263_p9)
}
 0x12e   :  { %163 = dma.vmem_to_hbm [thread:$0]  %s158_s13, 256, %s349_s3, [#allocation4], %s277_s0, %s277_s0, %s278_s9  }
 0x12f   :  { %271 = dma.done.wait [#allocation4], 256  }
 0x130   :  { %272 = vsyncadd [#allocation4], 4294967040 }
 0x131   :  { %167 = vsyncpa [#allocation3], 1 }
 0x132   :  { %168 = vsyncpa [#allocation6], 1 }
 0x133   :  { %169 = vsyncpa [#allocation4], 1 }

</bundles_post_ra>
